<compile_context>
chip_gen: v7x
topology: tpu7x:2x2x1
jax: 0.10.0
libtpu: 0.0.40
codegen_flags: <defaults>
</compile_context>

<pallas_src>
import functools

import jax
import jax.numpy as jnp
from jax import lax
from jax.experimental import pallas as pl
from jax.experimental.pallas import tpu as pltpu


def self_attention_kernel(x_ref, wkqv_ref, wo_ref, y_ref, att_ref, *,
                          apperture, ignore_itself, d):
    x = x_ref[...]                                             # (n, m) bf16

    # Fused K/Q/V projection: one wide MXU matmul, f32 accumulation.
    kqv = jnp.dot(x, wkqv_ref[...],
                  preferred_element_type=jnp.float32)          # (n, 3d) f32
    K = kqv[:, :d]
    Q = kqv[:, d:2 * d] * 0.06
    V = kqv[:, 2 * d:]

    # logits = Q @ K^T: contract the feature dims directly (no .T copy).
    logits = lax.dot_general(
        Q.astype(jnp.bfloat16), K.astype(jnp.bfloat16),
        dimension_numbers=(((1,), (1,)), ((), ())),
        preferred_element_type=jnp.float32)                    # (n, n)

    n = logits.shape[0]
    if ignore_itself or apperture > 0:
        neg_large = jnp.float32(-1e30)   # finite "-inf": same result for
                                         # partially masked rows, no NaNs.
        row = lax.broadcasted_iota(jnp.int32, (n, n), 0)
        col = lax.broadcasted_iota(jnp.int32, (n, n), 1)
        bad = None
        if apperture > 0:
            # tril(1, -ap) + triu(1, ap) == 1  <=>  |i - j| >= apperture
            bad = jnp.abs(row - col) >= apperture
        if ignore_itself:
            eye = row == col
            bad = eye if bad is None else (bad | eye)
        logits = jnp.where(bad, neg_large, logits)             # single fused select

    # Softmax along the last dim, f32 (single resident block).
    m_max = jnp.max(logits, axis=-1, keepdims=True)
    e = jnp.exp(logits - m_max)
    denom = jnp.sum(e, axis=-1, keepdims=True)
    att = e * pl.reciprocal(denom, approx=True)                # EUP, not VALU divide
    att_ref[...] = att

    # TODO(synk): nn.Dropout(0.5) is identity in eval mode; training-mode
    # stochastic drop (and torch's RNG stream) is not reproduced here.
    weights = att

    # y = matmul(V^T, weights)^T == weights^T @ V : contract dim 0 with dim 0.
    y = lax.dot_general(
        weights.astype(jnp.bfloat16), V.astype(jnp.bfloat16),
        dimension_numbers=(((0,), (0,)), ((), ())),
        preferred_element_type=jnp.float32)                    # (n, d)

    # output_linear: (n, d) @ (d, m) -> (n, m)
    y_ref[...] = jnp.dot(y.astype(jnp.bfloat16), wo_ref[...],
                         preferred_element_type=jnp.float32)


def self_attention(x, wk_t, wq_t, wv_t, wo_t, *, apperture=20,
                   ignore_itself=False):
    """Batched SelfAttention forward.

    x: (B, n, m) or (n, m).  wk_t/wq_t/wv_t: (m, d), wo_t: (d, m) —
    nn.Linear weights stored pre-transposed.  Returns (y, att) matching the
    PyTorch module per sequence: y (..., n, m), att (..., n, n), both f32.
    """
    squeeze = x.ndim == 2
    if squeeze:
        x = x[None]
    B, n, m_feat = x.shape
    d = wk_t.shape[1]

    # bf16 operands for the MXU (f32 accumulation inside the kernel).
    x_b = x.astype(jnp.bfloat16)
    w_kqv = jnp.concatenate([wk_t, wq_t, wv_t], axis=1).astype(jnp.bfloat16)
    wo_b = wo_t.astype(jnp.bfloat16)

    kernel = functools.partial(self_attention_kernel, apperture=apperture,
                               ignore_itself=ignore_itself, d=d)

    y, att = pl.pallas_call(
        kernel,
        out_shape=(
            jax.ShapeDtypeStruct((B, n, m_feat), jnp.float32),  # y
            jax.ShapeDtypeStruct((B, n, n), jnp.float32),       # att_weights_
        ),
        grid=(B,),
        in_specs=[
            pl.BlockSpec((None, n, m_feat), lambda b: (b, 0, 0)),  # x[b]
            pl.BlockSpec((m_feat, 3 * d), lambda b: (0, 0)),       # [Wk|Wq|Wv]
            pl.BlockSpec((d, m_feat), lambda b: (0, 0)),           # W_out
        ],
        out_specs=(
            pl.BlockSpec((None, n, m_feat), lambda b: (b, 0, 0)),
            pl.BlockSpec((None, n, n), lambda b: (b, 0, 0)),
        ),
        compiler_params=pltpu.CompilerParams(
            dimension_semantics=("parallel",)),
    )(x_b, w_kqv, wo_b)

    if squeeze:
        return y[0], att[0]
    return y, att


def reference_forward(x, wk_t, wq_t, wv_t, wo_t, apperture, ignore_itself=False):
    """Pure-JAX f32 reference mirroring the PyTorch forward (eval mode)."""
    K = x @ wk_t
    Q = (x @ wq_t) * 0.06
    V = x @ wv_t
    logits = Q @ K.T
    n = x.shape[0]
    i = jnp.arange(n)[:, None]
    j = jnp.arange(n)[None, :]
    if ignore_itself:
        logits = jnp.where(i == j, -jnp.inf, logits)
    if apperture > 0:
        logits = jnp.where(jnp.abs(i - j) >= apperture, -jnp.inf, logits)
    att = jax.nn.softmax(logits, axis=-1)
    y = (V.T @ att).T @ wo_t
    return y, att


if __name__ == "__main__":
    # Lane-dense shapes (multiples of 128 on the trailing axes) so all stores
    # are full-width; B independent sequences share one pallas_call.
    B, n, m_feat, d = 4, 128, 128, 128
    apperture = 20          # module default; actively masks bands with n=128

    key = jax.random.PRNGKey(0)
    kx, kk, kq, kv, ko = jax.random.split(key, 5)

    x = jax.random.normal(kx, (B, n, m_feat), dtype=jnp.float32)
    # Deterministic "Linear" weights, stored pre-transposed: (in, out).
    wk_t = jax.random.normal(kk, (m_feat, d), dtype=jnp.float32) * 0.1
    wq_t = jax.random.normal(kq, (m_feat, d), dtype=jnp.float32) * 0.1
    wv_t = jax.random.normal(kv, (m_feat, d), dtype=jnp.float32) * 0.1
    wo_t = jax.random.normal(ko, (d, m_feat), dtype=jnp.float32) * 0.1

    y, att = self_attention(x, wk_t, wq_t, wv_t, wo_t, apperture=apperture)
    jax.block_until_ready((y, att))

    # Reference: same bf16-rounded operands (the kernel feeds the MXU bf16),
    # all math in f32.  Tolerances account for bf16 intermediate casts and the
    # approximate reciprocal in the kernel's softmax.
    def _rnd(a):
        return a.astype(jnp.bfloat16).astype(jnp.float32)

    x_r, wk_r, wq_r, wv_r, wo_r = map(_rnd, (x, wk_t, wq_t, wv_t, wo_t))
    y_ref, att_ref = jax.vmap(
        lambda xi: reference_forward(xi, wk_r, wq_r, wv_r, wo_r, apperture)
    )(x_r)

    assert jnp.allclose(att, att_ref, atol=2e-2, rtol=2e-2), (
        "att mismatch: max err %e" % jnp.max(jnp.abs(att - att_ref)))
    assert jnp.allclose(y, y_ref, atol=5e-2, rtol=5e-2), (
        "y mismatch: max err %e" % jnp.max(jnp.abs(y - y_ref)))

    print("KERNEL_OK")
</pallas_src>

<mosaic_0001>
module attributes {stable_mosaic.version = 11 : i64} {
  func.func @self_attention_kernel(%arg0: i32, %arg1: memref<1x128x128xbf16, #tpu.memory_space<vmem>>, %arg2: memref<128x384xbf16, #tpu.memory_space<vmem>>, %arg3: memref<128x128xbf16, #tpu.memory_space<vmem>>, %arg4: memref<1x128x128xf32, #tpu.memory_space<vmem>>, %arg5: memref<1x128x128xf32, #tpu.memory_space<vmem>>) attributes {dimension_semantics = [#tpu.dimension_semantics<parallel>], iteration_bounds = array<i64: 4>, scalar_prefetch = 0 : i64, scratch_operands = 0 : i64, tpu.core_type = #tpu.core_type<tc>, window_params = [{transform_indices = @transform_0, window_bounds = array<i64: 1, 128, 128>}, {pipeline_mode = #tpu.pipeline_mode<synchronous>, transform_indices = @transform_1, window_bounds = array<i64: 128, 384>}, {pipeline_mode = #tpu.pipeline_mode<synchronous>, transform_indices = @transform_2, window_bounds = array<i64: 128, 128>}, {transform_indices = @transform_3, window_bounds = array<i64: 1, 128, 128>}, {transform_indices = @transform_4, window_bounds = array<i64: 1, 128, 128>}]} {
    %c0 = arith.constant 0 : index
    %c0_0 = arith.constant 0 : index
    %c0_1 = arith.constant 0 : index
    %0 = vector.load %arg1[%c0, %c0_0, %c0_1] : memref<1x128x128xbf16, #tpu.memory_space<vmem>>, vector<1x128x128xbf16>
    %1 = vector.shape_cast %0 : vector<1x128x128xbf16> to vector<128x128xbf16>
    %c0_2 = arith.constant 0 : index
    %c0_3 = arith.constant 0 : index
    %2 = vector.load %arg2[%c0_2, %c0_3] : memref<128x384xbf16, #tpu.memory_space<vmem>>, vector<128x384xbf16>
    %cst = arith.constant dense<0.000000e+00> : vector<128x384xf32>
    %3 = tpu.matmul %1, %2, %cst {dimension_numbers = #tpu.dot_dimension_numbers<[1], [0], [0], [1], [0, 0, 1, 1], [], []>} : vector<128x128xbf16>, vector<128x384xbf16>, vector<128x384xf32> -> vector<128x384xf32>
    %4 = vector.extract_strided_slice %3 {offsets = [0, 0], sizes = [128, 128], strides = [1, 1]} : vector<128x384xf32> to vector<128x128xf32>
    %5 = vector.extract_strided_slice %3 {offsets = [0, 128], sizes = [128, 128], strides = [1, 1]} : vector<128x384xf32> to vector<128x128xf32>
    %cst_4 = arith.constant 6.000000e-02 : f32
    %6 = vector.broadcast %cst_4 : f32 to vector<128x128xf32>
    %7 = arith.mulf %5, %6 : vector<128x128xf32>
    %8 = vector.extract_strided_slice %3 {offsets = [0, 256], sizes = [128, 128], strides = [1, 1]} : vector<128x384xf32> to vector<128x128xf32>
    %9 = arith.truncf %7 : vector<128x128xf32> to vector<128x128xbf16>
    %10 = arith.truncf %4 : vector<128x128xf32> to vector<128x128xbf16>
    %cst_5 = arith.constant dense<0.000000e+00> : vector<128x128xf32>
    %11 = tpu.matmul %9, %10, %cst_5 {dimension_numbers = #tpu.dot_dimension_numbers<[1], [1], [0], [0], [0, 0, 1, 0], [], []>} : vector<128x128xbf16>, vector<128x128xbf16>, vector<128x128xf32> -> vector<128x128xf32>
    %12 = tpu.iota {dimensions = array<i32: 0>} : vector<128x128xi32>
    %13 = tpu.iota {dimensions = array<i32: 1>} : vector<128x128xi32>
    %14 = arith.subi %12, %13 : vector<128x128xi32>
    %15 = math.absi %14 : vector<128x128xi32>
    %c20_i32 = arith.constant 20 : i32
    %16 = vector.broadcast %c20_i32 : i32 to vector<128x128xi32>
    %17 = arith.cmpi sge, %15, %16 : vector<128x128xi32>
    %cst_6 = arith.constant -1.000000e+30 : f32
    %18 = vector.broadcast %cst_6 : f32 to vector<128x128xf32>
    %19 = arith.select %17, %18, %11 : vector<128x128xi1>, vector<128x128xf32>
    %cst_7 = arith.constant dense<0xFF800000> : vector<128xf32>
    %20 = vector.multi_reduction <maximumf>, %19, %cst_7 [1] : vector<128x128xf32> to vector<128xf32>
    %21 = vector.shape_cast %20 : vector<128xf32> to vector<128x1xf32>
    %22 = vector.broadcast %21 : vector<128x1xf32> to vector<128x128xf32>
    %23 = arith.subf %19, %22 : vector<128x128xf32>
    %24 = math.exp %23 : vector<128x128xf32>
    %cst_8 = arith.constant dense<0.000000e+00> : vector<128xf32>
    %25 = vector.multi_reduction <add>, %24, %cst_8 [1] : vector<128x128xf32> to vector<128xf32>
    %26 = vector.shape_cast %25 : vector<128xf32> to vector<128x1xf32>
    %27 = tpu.reciprocal %26 {approx = true} : vector<128x1xf32> -> vector<128x1xf32>
    %28 = vector.broadcast %27 : vector<128x1xf32> to vector<128x128xf32>
    %29 = arith.mulf %24, %28 : vector<128x128xf32>
    %c0_9 = arith.constant 0 : index
    %c0_10 = arith.constant 0 : index
    %c0_11 = arith.constant 0 : index
    %30 = vector.load %arg5[%c0_9, %c0_10, %c0_11] : memref<1x128x128xf32, #tpu.memory_space<vmem>>, vector<1x128x128xf32>
    %31 = vector.shape_cast %30 : vector<1x128x128xf32> to vector<128x128xf32>
    %32 = vector.shape_cast %29 : vector<128x128xf32> to vector<1x128x128xf32>
    tpu.vector_store %arg5[%c0_9, %c0_10, %c0_11], %32 {strides = array<i32>} : memref<1x128x128xf32, #tpu.memory_space<vmem>>, vector<1x128x128xf32>,
    %33 = arith.truncf %29 : vector<128x128xf32> to vector<128x128xbf16>
    %34 = arith.truncf %8 : vector<128x128xf32> to vector<128x128xbf16>
    %cst_12 = arith.constant dense<0.000000e+00> : vector<128x128xf32>
    %35 = tpu.matmul %33, %34, %cst_12 {dimension_numbers = #tpu.dot_dimension_numbers<[0], [0], [1], [1], [0, 1, 1, 1], [], []>} : vector<128x128xbf16>, vector<128x128xbf16>, vector<128x128xf32> -> vector<128x128xf32>
    %36 = arith.truncf %35 : vector<128x128xf32> to vector<128x128xbf16>
    %c0_13 = arith.constant 0 : index
    %c0_14 = arith.constant 0 : index
    %37 = vector.load %arg3[%c0_13, %c0_14] : memref<128x128xbf16, #tpu.memory_space<vmem>>, vector<128x128xbf16>
    %cst_15 = arith.constant dense<0.000000e+00> : vector<128x128xf32>
    %38 = tpu.matmul %36, %37, %cst_15 {dimension_numbers = #tpu.dot_dimension_numbers<[1], [0], [0], [1], [0, 0, 1, 1], [], []>} : vector<128x128xbf16>, vector<128x128xbf16>, vector<128x128xf32> -> vector<128x128xf32>
    %c0_16 = arith.constant 0 : index
    %c0_17 = arith.constant 0 : index
    %c0_18 = arith.constant 0 : index
    %39 = vector.load %arg4[%c0_16, %c0_17, %c0_18] : memref<1x128x128xf32, #tpu.memory_space<vmem>>, vector<1x128x128xf32>
    %40 = vector.shape_cast %39 : vector<1x128x128xf32> to vector<128x128xf32>
    %41 = vector.shape_cast %38 : vector<128x128xf32> to vector<1x128x128xf32>
    tpu.vector_store %arg4[%c0_16, %c0_17, %c0_18], %41 {strides = array<i32>} : memref<1x128x128xf32, #tpu.memory_space<vmem>>, vector<1x128x128xf32>,
    return
  }
  func.func @transform_0(%arg0: i32) -> (i32, i32, i32) {
    %c0_i32 = arith.constant 0 : i32
    %c0_i32_0 = arith.constant 0 : i32
    %c0_i32_1 = arith.constant 0 : i32
    return %arg0, %c0_i32, %c0_i32_0 : i32, i32, i32
  }
  func.func @transform_1(%arg0: i32) -> (i32, i32) {
    %c0_i32 = arith.constant 0 : i32
    %c0_i32_0 = arith.constant 0 : i32
    %c0_i32_1 = arith.constant 0 : i32
    return %c0_i32, %c0_i32_0 : i32, i32
  }
  func.func @transform_2(%arg0: i32) -> (i32, i32) {
    %c0_i32 = arith.constant 0 : i32
    %c0_i32_0 = arith.constant 0 : i32
    %c0_i32_1 = arith.constant 0 : i32
    return %c0_i32, %c0_i32_0 : i32, i32
  }
  func.func @transform_3(%arg0: i32) -> (i32, i32, i32) {
    %c0_i32 = arith.constant 0 : i32
    %c0_i32_0 = arith.constant 0 : i32
    %c0_i32_1 = arith.constant 0 : i32
    return %arg0, %c0_i32, %c0_i32_0 : i32, i32, i32
  }
  func.func @transform_4(%arg0: i32) -> (i32, i32, i32) {
    %c0_i32 = arith.constant 0 : i32
    %c0_i32_0 = arith.constant 0 : i32
    %c0_i32_1 = arith.constant 0 : i32
    return %arg0, %c0_i32, %c0_i32_0 : i32, i32, i32
  }
}

</mosaic_0001>

<bundles_post_ra>
// kernel: tpu_custom_call.1
= control target key start
LH: loop header
LB: loop body
LE: loop exit
PB: predicated region body
PF: predicated region fallthrough
CT: control target
= control target key end

     0   :  { %10 = vsyncpa [#allocation3], 0  ;;  %s2782_s0 = inlined_call_operand.hbm [shape: bf16[4,128,128], index: 0, kind: input, shape index: {}]   ;;  %s2783_s1 = inlined_call_operand.hbm [shape: bf16[128,384], index: 1, kind: input, shape index: {}]   ;;  %s2784_s2 = inlined_call_operand.hbm [shape: bf16[128,128], index: 2, kind: input, shape index: {}]   ;;  %s2785_s3 = inlined_call_operand.hbm [shape: f32[4,128,128], index: 3, kind: output, shape index: {0}]   ;;  %s2786_s4 = inlined_call_operand.hbm [shape: f32[4,128,128], index: 4, kind: output, shape index: {1}]  }
   0x1   :  { %12 = vsyncpa [#allocation3 + $0x1], 0 }
   0x2   :  { %13 = vsyncpa [#allocation6], 0 }
   0x3   :  { %14 = vsyncpa [#allocation4], 0 }
   0x4   :  { %16 = vsyncpa [#allocation4 + $0x1], 0 }
   0x5   :  { %17 = vsyncpa [#allocation10], 0 }
   0x6   :  { %19 = vsyncpa [#allocation10 + $0x1], 0  ;;  %s2259_s15 = smov 0   ;;  %s2261_s16 = smov 0  }
   0x7   :  { %s2263_s17 = smov 0   ;;  %s2265_s18 = smov 0  }
   0x8 LB: > { %s2280_s19 = sadd.s32 4294967295, %s2220_s18   ;;  %s1568_s20 = sadd.s32 4294967294, %s2220_s18   ;;  %s2220_s18 = sphi %s2265_s18, %s2805_s18   ;;  %s2216_s17 = sphi %s2263_s17, %s2804_s17   ;;  %s2212_s16 = sphi %s2261_s16, %s2803_s16   ;;  %s2208_s15 = sphi %s2259_s15, %s2802_s15  }
   0x9   : > { %p45_p0 = scmp.ne.s32.totalorder %s2212_s16, %s2208_s15  ;;  %p2787_p1 = scmp.eq.s32.totalorder %s2280_s19, 0 }
   0xa   : > { %p117_p3 = scmp.eq.s32.totalorder %s1568_s20, 3  ;;  %p1569_p5 = scmp.ge.s32.totalorder %s2220_s18, 1 }
   0xb   : > { %p2289_p4 = por %p2787_p1, %p45_p0  ;;  %p150_p7 = scmp.lt.s32.totalorder %s2220_s18, 5 }
   0xc   : > { %p2294_p6 = por %p117_p3, %p45_p0  ;;  %s2222_s24 = smov [#allocation5]  }
   0xd   : > { %s2790_s21 = scalar_select %p2289_p4, 1, 0 }
   0xe   : > { %s2791_s22 = scalar_select %p2294_p6, 1, 0 }
   0xf   : > { %p2299_p8 = pnand %p1569_p5, %p150_p7  ;;  %s162_s25 = sshll.u32 %s2222_s24, 4  ;;  %s163_s25 = int_to_ptr.vmem [resolvable:$true] %s162_s25 }
  0x10   : > { %s2223_s27 = smov [#allocation7]   ;;  %s2032_s5 = scalar_lea.hbm %s2783_s1, 3072 }
  0x11   : > { %s2792_s23 = scalar_select %p2299_p8, 1, 0 }
  0x12   : > { %p1855_p9 = pneg %p2299_p8  ;;  %s175_s28 = sshll.u32 %s2223_s27, 4  ;;  %s2311_s28 = int_to_ptr.vmem [resolvable:$true] %s175_s28 }
  0x13   : > { %p2033_p11 = scmp.ne.s32.totalorder %s2783_s1, %s2032_s5  ;;  %p2039_p3 = scmp.lt.u32.totalorder %s2032_s5, %s2783_s1 }
  0x14   : > { %p2307_p10 = pnand %p1855_p9, %p2787_p1 }
  0x16   : > { %p2034_p12 = pneg %p2307_p10 }
  0x18   : > { %p2035_p13 = pnand %p2034_p12, %p2033_p11 }
  0x1a   : > { %p2036_p0 = pneg %p2035_p13 }
  0x1c   : > { %p2041_p5 = pnand %p2039_p3, %p2036_p0 }
  0x1e   : > { %2044 = shalt.err (!%p2041_p5)
}
  0x1f   : > { %s2045_s10 = scalar_lea.vmem %s163_s25, 3072  ;;  %p2053_p2 = scmp.lt.s32.totalorder %s163_s25, %s163_s25 }
  0x20   : > { %p2046_p7 = scmp.ne.s32.totalorder %s163_s25, %s2045_s10  ;;  %p2054_p6 = scmp.lt.s32.totalorder %s2045_s10, %s2045_s10 }
  0x22   : > { %p2048_p9 = pnand %p2046_p7, %p2034_p12  ;;  %p2055_p4 = por %p2054_p6, %p2053_p2 }
  0x24   : > { %p2049_p1 = pneg %p2048_p9 }
  0x26   : > { %p2056_p8 = pnand %p2055_p4, %p2049_p1 }
  0x28   : > { %2059 = shalt.err (!%p2056_p8)
}
  0x29   : > { %s2224_s11 = smov 192   ;;  %s2225_s12 = smov 12  }
  0x2a   : > { %1858 = dma.hbm_to_vmem [thread:$0]  (!%p2307_p10), %s2783_s1, 3072, %s163_s25, [#allocation6], %s2224_s11, %s2224_s11, %s2225_s12  }
  0x2b   : > { %s2060_s27 = scalar_lea.hbm %s2784_s2, 1024 }
  0x2c   : > { %p2061_p11 = scmp.ne.s32.totalorder %s2784_s2, %s2060_s27  ;;  %p2067_p4 = scmp.lt.u32.totalorder %s2060_s27, %s2784_s2 }
  0x2e   : > { %p2063_p1 = pnand %p2061_p11, %p2034_p12 }
  0x30   : > { %p2064_p2 = pneg %p2063_p1 }
  0x32   : > { %p2069_p6 = pnand %p2067_p4, %p2064_p2 }
  0x34   : > { %2072 = shalt.err (!%p2069_p6)
}
  0x35   : > { %s2073_s25 = scalar_lea.vmem %s2311_s28, 1024  ;;  %p2081_p3 = scmp.lt.s32.totalorder %s2311_s28, %s2311_s28 }
  0x36   : > { %p2074_p8 = scmp.ne.s32.totalorder %s2311_s28, %s2073_s25  ;;  %p2082_p5 = scmp.lt.s32.totalorder %s2073_s25, %s2073_s25 }
  0x38   : > { %p2076_p13 = pnand %p2074_p8, %p2034_p12  ;;  %p2083_p7 = por %p2082_p5, %p2081_p3 }
  0x3a   : > { %p2077_p0 = pneg %p2076_p13 }
  0x3c   : > { %p2084_p9 = pnand %p2083_p7, %p2077_p0 }
  0x3e   : > { %2087 = shalt.err (!%p2084_p9)
}
  0x3f   : > { %s2226_s7 = smov 64   ;;  %s2227_s8 = smov 4  }
  0x40   : > { %1861 = dma.hbm_to_vmem [thread:$0]  (!%p2307_p10), %s2784_s2, 1024, %s2311_s28, [#allocation6], %s2226_s7, %s2226_s7, %s2227_s8  }
  0x41   : > { %s2364_s11 = sadd.s32 1, %s2220_s18   ;;  %s32_s13 = sadd.s32 1, %s2216_s17 }
  0x42   : > { %s29_s12 = ssub.s32 %s2220_s18, %s2364_s11  ;;  %p39_p11 = scmp.ne.s32.totalorder %s2216_s17, %s2212_s16 }
  0x43   : > { %p30_p12 = scmp.eq.s32.totalorder %s29_s12, 0  ;;  %p40_p1 = scmp.eq.s32.totalorder %s2220_s18, 0 }
  0x44   : > { %p2794_p4 = scmp.eq.s32.totalorder %s2280_s19, 3  ;;  %p1875_p8 = scmp.lt.s32.totalorder %s2220_s18, 4 }
  0x45   : > { %s2373_s14 = scalar_select %p30_p12, %s2216_s17, %s32_s13  }
  0x46   : > { %p41_p2 = por %p40_p1, %p39_p11  ;;  %p2377_p6 = por %p2794_p4, %p39_p11 }
  0x47   : > { %s189_s20 = sand.u32 1, %s2216_s17   ;;  %s1646_s28 = sshll.u32 %s2220_s18, 10 }
  0x48   : > { %s1573_s24 = sshll.u32 %s189_s20, 6  ;;  %s2387_s30 = scalar_lea.hbm %s2782_s0, %s1646_s28 }
  0x49   : > { %s193_s5 = scalar_lea.vmem [#allocation2], %s1573_s24  ;;  %p2391_p10 = pnand %p1875_p8, %p41_p2 }
  0x4a   : > { %s200_s6 = sshll.u32 %s193_s5, 4  ;;  %s2395_s9 = scalar_lea.sflag [#allocation3], %s189_s20  ;;  %s2389_s6 = int_to_ptr.vmem [resolvable:$true] %s200_s6 }
  0x4b   : > { %s2088_s10 = scalar_lea.hbm %s2387_s30, 1024  ;;  %p2090_p0 = pneg %p2391_p10 }
  0x4c   : > { %p2089_p13 = scmp.ne.s32.totalorder %s2387_s30, %s2088_s10  ;;  %s2093_s24 = scalar_lea.hbm %s2782_s0, 4096 }
  0x4d   : > { %p2094_p7 = scmp.lt.u32.totalorder %s2387_s30, %s2782_s0  ;;  %p2095_p9 = scmp.lt.u32.totalorder %s2093_s24, %s2088_s10 }
  0x4e   : > { %p2091_p3 = pnand %p2090_p0, %p2089_p13  ;;  %p2097_p11 = scmp.lt.u32.totalorder %s2088_s10, %s2387_s30 }
  0x4f   : > { %p2096_p12 = por %p2095_p9, %p2094_p7 }
  0x50   : > { %p2092_p5 = pneg %p2091_p3 }
  0x51   : > { %p2098_p1 = por %p2097_p11, %p2096_p12 }
  0x53   : > { %p2099_p2 = pnand %p2098_p1, %p2092_p5 }
  0x55   : > { %2102 = shalt.err (!%p2099_p2)
}
  0x56   : > { %s2103_s20 = scalar_lea.vmem %s2389_s6, 1024  ;;  %s2228_s29 = smov [#allocation2]  }
  0x57   : > { %p2104_p4 = scmp.ne.s32.totalorder %s2389_s6, %s2103_s20  ;;  %s2108_s5 = sshll.u32 %s2228_s29, 4  ;;  %s2109_s5 = int_to_ptr.vmem [resolvable:$false] %s2108_s5 }
  0x58   : > { %s2110_s12 = scalar_lea.vmem %s2109_s5, 2048  ;;  %p2111_p3 = scmp.lt.s32.totalorder %s2389_s6, %s2109_s5 }
  0x59   : > { %p2106_p8 = pnand %p2104_p4, %p2090_p0  ;;  %p2112_p7 = scmp.lt.s32.totalorder %s2110_s12, %s2103_s20 }
  0x5b   : > { %p2107_p13 = pneg %p2106_p8  ;;  %p2113_p9 = por %p2112_p7, %p2111_p3 }
  0x5d   : > { %p2114_p12 = pnand %p2113_p9, %p2107_p13 }
  0x5f   : > { %2117 = shalt.err (!%p2114_p12)
}
  0x60   : > { %1865 = dma.hbm_to_vmem [thread:$0]  (!%p2391_p10), %s2387_s30, 1024, %s2389_s6, %s2395_s9, %s2226_s7, %s2226_s7, %s2227_s8  }
  0x61   : > { %p2797_p0 = scmp.ne.s32.totalorder %s2792_s23, 0 }
  0x62   : > { %s2429_s10 = sand.u32 (!%p2797_p0), 1, %s2212_s16   ;;  %p2798_p5 = scmp.ne.s32.totalorder (!%p2797_p0), %s2790_s21, 0 }
  0x63   : > { %212 = sbr.rel (%p2797_p0) target bundleno = 1536 (0x600), region = 32  ;;  %s1577_s13 = sshll.u32 (!%p2797_p0), %s2429_s10, 6 }
  0x64   : > { %s215_s24 = scalar_lea.sflag (!%p2797_p0), [#allocation3], %s2429_s10  ;;  %s2433_s28 = scalar_lea.vmem (!%p2797_p0), [#allocation2], %s1577_s13 }
  0x6a   : > { %2191 = dma.done.wait (%p2798_p5), %s215_s24, 1024  }
  0x6b   : > { %2193 = vsyncadd (%p2798_p5), %s215_s24, 4294966272  ;;  %p2799_p10 = scmp.eq.s32.totalorder %s2280_s19, 0 }
  0x6d   : > { %2195 = dma.done.wait (%p2799_p10), [#allocation6], 4096   ;;  %p2800_p11 = pmov %p2799_p10 }
  0x6e   : > { %v2229_v0 = vmov 0   ;;  %v1920_v1 = vld [vmem:[#allocation5 + $0x4] ss:$12 sps:$4 sm:$0xff]   ;;  %v1922_v2 = vld [vmem:[#allocation5] ss:$12 sps:$4 sm:$0xff]   ;;  %v2453_v20 = vld [vmem:[%s2433_s28 + $0x18] sm:$0xff]  }
  0x6f   : > { %2197 = vsyncadd (%p2800_p11), [#allocation6], 4294963200  ;;  %513 = vmatprep.mubr.bf16.mxu0 %v2229_v0  ;;  %481 = vmatprep.subr.bf16.mxu0 %v1920_v1  ;;  %v1923_v3 = vld [vmem:[#allocation5 + $0x1c] ss:$12 sps:$4 sm:$0xff]   ;;  %v1925_v4 = vld [vmem:[#allocation5 + $0x18] ss:$12 sps:$4 sm:$0xff]  }
  0x70   : > { %482 = vmatpush1.bf16.msra.mxu0 %v1922_v2  ;;  %v1926_v5 = vld [vmem:[#allocation5 + $0x34] ss:$12 sps:$4 sm:$0xff]   ;;  %v1928_v6 = vld [vmem:[#allocation5 + $0x30] ss:$12 sps:$4 sm:$0xff]   ;;  %v1929_v7 = vld [vmem:[#allocation5 + $0x4c] ss:$12 sps:$4 sm:$0xff]  }
  0x71   : > { %483 = vmatprep.subr.bf16.mxu0 %v1923_v3  ;;  %v1931_v8 = vld [vmem:[#allocation5 + $0x48] ss:$12 sps:$4 sm:$0xff]   ;;  %v1944_v9 = vld [vmem:[%s2433_s28] sm:$0xff]   ;;  %v1940_v15 = vld [vmem:[#allocation5 + $0x90] ss:$12 sps:$4 sm:$0xff]   ;;  %s1580_s21 = sshll.u32 %s2429_s10, 7 }
  0x72   : > { %v1932_v10 = vld [vmem:[#allocation5 + $0x64] ss:$12 sps:$4 sm:$0xff]   ;;  %1729 = vmatprep.mubr.bf16.mxu1 %v1944_v9  ;;  %v1934_v11 = vld [vmem:[#allocation5 + $0x60] ss:$12 sps:$4 sm:$0xff]   ;;  %v1935_v12 = vld [vmem:[#allocation5 + $0x7c] ss:$12 sps:$4 sm:$0xff]  }
  0x73   : > { %v1937_v13 = vld [vmem:[#allocation5 + $0x78] ss:$12 sps:$4 sm:$0xff]   ;;  %v1938_v14 = vld [vmem:[#allocation5 + $0x94] ss:$12 sps:$4 sm:$0xff]   ;;  %v2445_v18 = vld [vmem:[%s2433_s28 + $0x8] sm:$0xff]   ;;  %s2637_s23 = scalar_lea.vmem [#allocation9], %s1580_s21 }
  0x74   : > { %484 = vmatpush1.bf16.msra.mxu0 %v1925_v4  ;;  %v1941_v16 = vld [vmem:[#allocation5 + $0xac] ss:$12 sps:$4 sm:$0xff]   ;;  %v1943_v17 = vld [vmem:[#allocation5 + $0xa8] ss:$12 sps:$4 sm:$0xff]   ;;  %v2457_v21 = vld [vmem:[%s2433_s28 + $0x20] sm:$0xff]   ;;  %s1647_s7 = sshll.u32 %s2280_s19, 11 }
  0x75   : > { %485 = vmatprep.subr.bf16.mxu0 %v1926_v5  ;;  %v2449_v19 = vld [vmem:[%s2433_s28 + $0x10] sm:$0xff]   ;;  %v2461_v22 = vld [vmem:[%s2433_s28 + $0x28] sm:$0xff]   ;;  %v2469_v24 = vld [vmem:[%s2433_s28 + $0x38] sm:$0xff]   ;;  %s2676_s6 = scalar_lea.hbm %s2786_s4, %s1647_s7  ;;  %s1444_s25 = sshll.u32 %s2637_s23, 4  ;;  %s2679_s25 = int_to_ptr.vmem [resolvable:$true] %s1444_s25 }
  0x76   : > { %v2465_v23 = vld [vmem:[%s2433_s28 + $0x30] sm:$0xff]   ;;  %s1415_s9 = scalar_lea.sflag [#allocation10], %s2429_s10  ;;  %s2118_s27 = scalar_lea.vmem %s2679_s25, 2048 }
  0x77   : > { %p2119_p1 = scmp.ne.s32.totalorder %s2679_s25, %s2118_s27  ;;  %s2230_s20 = smov [#allocation9]  }
  0x78   : > { %486 = vmatpush1.bf16.msra.mxu0 %v1928_v6  ;;  %s2122_s29 = sshll.u32 %s2230_s20, 4  ;;  %s2123_s29 = int_to_ptr.vmem [resolvable:$false] %s2122_s29 }
  0x79   : > { %487 = vmatprep.subr.bf16.mxu0 %v1929_v7  ;;  %p2120_p2 = pnand %p2119_p1, %p2377_p6  ;;  %s2124_s5 = scalar_lea.vmem %s2123_s29, 4096 }
  0x7a   : > { %p2125_p8 = scmp.lt.s32.totalorder %s2679_s25, %s2123_s29  ;;  %p2126_p13 = scmp.lt.s32.totalorder %s2124_s5, %s2118_s27 }
  0x7b   : > { %p2121_p4 = pneg %p2120_p2 }
  0x7c   : > { %488 = vmatpush1.bf16.msra.mxu0 %v1931_v8  ;;  %p2127_p3 = por %p2126_p13, %p2125_p8 }
  0x7d   : > { %489 = vmatprep.subr.bf16.mxu0 %v1932_v10 }
  0x7e   : > { %p2128_p7 = pnand %p2127_p3, %p2121_p4 }
  0x80   : > { %490 = vmatpush1.bf16.msra.mxu0 %v1934_v11 }
  0x81   : > { %491 = vmatprep.subr.bf16.mxu0 %v1935_v12 }
  0x84   : > { %492 = vmatpush1.bf16.msra.mxu0 %v1937_v13 }
  0x85   : > { %493 = vmatprep.subr.bf16.mxu0 %v1938_v14 }
  0x88   : > { %494 = vmatpush1.bf16.msra.mxu0 %v1940_v15 }
  0x89   : > { %495 = vmatprep.subr.bf16.mxu0 %v1941_v16 }
  0x8c   : > { %496 = vmatpush1.bf16.msra.mxu0 %v1943_v17 }
  0x8f   : > { %514 = vmatmul.mubr.bf16.vlgmr.msra.gmra.mrb[0].mxu0 %v1944_v9 }
  0x90   : > { %523 = vmatprep.mubr.bf16.mxu0 %v2229_v0 }
  0x97   : > { %524 = vmatmul.mubr.bf16.gmra.mrb[4].mxu0 %v2445_v18 }
  0x98   : > { %533 = vmatprep.mubr.bf16.mxu0 %v2229_v0 }
  0x9f   : > { %534 = vmatmul.mubr.bf16.gmra.mrb[8].mxu0 %v2449_v19 }
  0xa0   : > { %543 = vmatprep.mubr.bf16.mxu0 %v2229_v0 }
  0xa7   : > { %544 = vmatmul.mubr.bf16.gmra.mrb[12].mxu0 %v2453_v20 }
  0xa8   : > { %553 = vmatprep.mubr.bf16.mxu0 %v2229_v0 }
  0xaf   : > { %554 = vmatmul.mubr.bf16.gmra.mrb[16].mxu0 %v2457_v21 }
  0xb0   : > { %563 = vmatprep.mubr.bf16.mxu0 %v2229_v0 }
  0xb7   : > { %564 = vmatmul.mubr.bf16.gmra.mrb[20].mxu0 %v2461_v22 }
  0xb8   : > { %573 = vmatprep.mubr.bf16.mxu0 %v2229_v0 }
  0xbf   : > { %574 = vmatmul.mubr.bf16.gmra.mrb[24].mxu0 %v2465_v23 }
  0xc0   : > { %583 = vmatprep.mubr.bf16.mxu0 %v2229_v0 }
  0xc7   : > { %584 = vmatmul.mubr.bf16.gmra.mrb[28].mxu0 %v2469_v24 }
 0x162   : > { %v515_v25 = vpop.f32.mrb[0].mxu0 }
 0x163   : > { %v517_v26 = vpop.f32.mrb[1].mxu0 }
 0x164   : > { %v519_v27 = vpop.f32.mrb[2].mxu0  ;;  %v691_v30 = vmul.f32 0.06, %v517_v26 }
 0x165   : > { %v715_v28 = vpack.c.bf16 %v519_v27, %v515_v25  ;;  %v521_v29 = vpop.f32.mrb[3].mxu0 }
 0x166   : > { %v692_v31 = vmul.f32 0.06, %v521_v29 }
 0x167   : > { %1745 = vmatprep.subr.bf16.mxu0 %v715_v28 }
 0x168   : > { %v707_v32 = vpack.c.bf16 %v692_v31, %v691_v30  ;;  %1746 = vmatpush3.bf16.xpose.msra.mxu0 %v715_v28 }
 0x16a   : > { %v525_v33 = vpop.f32.mrb[4].mxu0  ;;  %1761 = vmatprep.mubr.bf16.mxu0 %v707_v32  ;;  %v1952_v32 = vld [vmem:[#allocation5 + $0x8] ss:$12 sps:$4 sm:$0xff]  }
 0x16b   : > { %v527_v34 = vpop.f32.mrb[5].mxu0  ;;  %1713 = vmatprep.subr.bf16.mxu1 %v1952_v32 }
 0x16c   : > { %v529_v35 = vpop.f32.mrb[6].mxu0  ;;  %v2472_v38 = vmul.f32 0.06, %v527_v34  ;;  %1714 = vmatpush3.bf16.msra.mxu1 %v1952_v32 }
 0x16d   : > { %v716_v36 = vpack.c.bf16 %v529_v35, %v525_v33  ;;  %v531_v37 = vpop.f32.mrb[7].mxu0  ;;  %v820_v33 = vlaneseq }
 0x16e   : > { %v2474_v39 = vmul.f32 0.06, %v531_v37 }
 0x16f   : > { %1747 = vmatprep.subr.bf16.mxu0 %v716_v36  ;;  %v2478_v34 = vshrl.u32 %v820_v33, 7 }
 0x170   : > { %v708_v40 = vpack.c.bf16 %v2474_v39, %v2472_v38  ;;  %1748 = vmatpush3.bf16.xpose.msra.mxu0 %v716_v36  ;;  %v2481_v36 = vand.u32 127, %v820_v33 }
 0x171   : > { %v823_v35 = vadd.s32 16, %v2478_v34  ;;  %v824_v37 = vadd.s32 24, %v2478_v34  ;;  %v834_v32 = vadd.s32 104, %v2478_v34 }
 0x172   : > { %v535_v41 = vpop.f32.mrb[8].mxu0  ;;  %v839_v39 = vsub.s32 %v2478_v34, %v2481_v36 }
 0x173   : > { %v537_v42 = vpop.f32.mrb[9].mxu0  ;;  %v841_v38 = vsub.s32 %v823_v35, %v2481_v36 }
 0x174   : > { %v539_v43 = vpop.f32.mrb[10].mxu0  ;;  %v695_v46 = vmul.f32 0.06, %v537_v42 }
 0x175   : > { %v717_v44 = vpack.c.bf16 %v539_v43, %v535_v41  ;;  %v541_v45 = vpop.f32.mrb[11].mxu0  ;;  %v842_v41 = vsub.s32 %v824_v37, %v2481_v36  ;;  %v862_v42 = vsub.s32 0, %v841_v38  ;;  %v827_v43 = vadd.s32 48, %v2478_v34 }
 0x176   : > { %v696_v47 = vmul.f32 0.06, %v541_v45 }
 0x177   : > { %1749 = vmatprep.subr.bf16.mxu0 %v717_v44 }
 0x178   : > { %v709_v48 = vpack.c.bf16 %v696_v47, %v695_v46  ;;  %1750 = vmatpush3.bf16.xpose.msra.mxu0 %v717_v44  ;;  %v856_v44 = vsub.s32 0, %v839_v39  ;;  %v828_v46 = vadd.s32 56, %v2478_v34  ;;  %v865_v47 = vsub.s32 0, %v842_v41 }
 0x17a   : > { %v545_v49 = vpop.f32.mrb[12].mxu0 }
 0x17b   : > { %v547_v50 = vpop.f32.mrb[13].mxu0 }
 0x17c   : > { %v549_v51 = vpop.f32.mrb[14].mxu0  ;;  %v697_v54 = vmul.f32 0.06, %v547_v50  ;;  %v825_v50 = vadd.s32 32, %v2478_v34 }
 0x17d   : > { %v718_v52 = vpack.c.bf16 %v549_v51, %v545_v49  ;;  %v551_v53 = vpop.f32.mrb[15].mxu0  ;;  %v845_v49 = vsub.s32 %v827_v43, %v2481_v36  ;;  %v1614_v51 = vmin.u32 %v856_v44, %v839_v39  ;;  %v852_v44 = vsub.s32 %v834_v32, %v2481_v36 }
 0x17e   : > { %v698_v55 = vmul.f32 0.06, %v551_v53  ;;  %v846_v53 = vsub.s32 %v828_v46, %v2481_v36 }
 0x17f   : > { %1751 = vmatprep.subr.bf16.mxu0 %v718_v52  ;;  %vm903_vm1 = vcmp.ge.s32.totalorder %v1614_v51, 20 }
 0x180   : > { %v710_v56 = vpack.c.bf16 %v698_v55, %v697_v54  ;;  %1752 = vmatpush3.bf16.xpose.msra.mxu0 %v718_v52  ;;  %v826_v54 = vadd.s32 40, %v2478_v34  ;;  %v1617_v55 = vmin.u32 %v865_v47, %v842_v41  ;;  %v835_v41 = vadd.s32 112, %v2478_v34 }
 0x182   : > { %v555_v57 = vpop.f32.mrb[16].mxu0  ;;  %vm906_vm2 = vcmp.ge.s32.totalorder %v1617_v55, 20 }
 0x183   : > { %v557_v58 = vpop.f32.mrb[17].mxu0 }
 0x184   : > { %v559_v59 = vpop.f32.mrb[18].mxu0  ;;  %v699_v62 = vmul.f32 0.06, %v557_v58  ;;  %v831_v58 = vadd.s32 80, %v2478_v34 }
 0x185   : > { %v719_v60 = vpack.c.bf16 %v559_v59, %v555_v57  ;;  %v561_v61 = vpop.f32.mrb[19].mxu0  ;;  %v843_v57 = vsub.s32 %v825_v50, %v2481_v36  ;;  %v853_v50 = vsub.s32 %v835_v41, %v2481_v36 }
 0x186   : > { %v700_v63 = vmul.f32 0.06, %v561_v61  ;;  %v877_v61 = vsub.s32 0, %v846_v53 }
 0x187   : > { %1753 = vmatprep.subr.bf16.mxu0 %v719_v60 }
 0x188   : > { %v711_v0 = vpack.c.bf16 %v700_v63, %v699_v62  ;;  %1754 = vmatpush3.bf16.xpose.msra.mxu0 %v719_v60  ;;  %v844_v62 = vsub.s32 %v826_v54, %v2481_v36  ;;  %v832_v63 = vadd.s32 88, %v2478_v34 }
 0x18a   : > { %v565_v1 = vpop.f32.mrb[20].mxu0 }
 0x18b   : > { %v567_v2 = vpop.f32.mrb[21].mxu0 }
 0x18c   : > { %v569_v3 = vpop.f32.mrb[22].mxu0  ;;  %v701_v6 = vmul.f32 0.06, %v567_v2 }
 0x18d   : > { %v720_v4 = vpack.c.bf16 %v569_v3, %v565_v1  ;;  %v571_v5 = vpop.f32.mrb[23].mxu0 }
 0x18e   : > { %v702_v7 = vmul.f32 0.06, %v571_v5  ;;  %v868_v5 = vsub.s32 0, %v843_v57 }
 0x18f   : > { %1755 = vmatprep.subr.bf16.mxu0 %v720_v4 }
 0x190   : > { %v712_v8 = vpack.c.bf16 %v702_v7, %v701_v6  ;;  %1756 = vmatpush3.bf16.xpose.msra.mxu0 %v720_v4  ;;  %v849_v6 = vsub.s32 %v831_v58, %v2481_v36 }
 0x192   : > { %v575_v9 = vpop.f32.mrb[24].mxu0 }
 0x193   : > { %v577_v10 = vpop.f32.mrb[25].mxu0 }
 0x194   : > { %v579_v11 = vpop.f32.mrb[26].mxu0  ;;  %v703_v14 = vmul.f32 0.06, %v577_v10  ;;  %v871_v10 = vsub.s32 0, %v844_v62 }
 0x195   : > { %v721_v12 = vpack.c.bf16 %v579_v11, %v575_v9  ;;  %v581_v13 = vpop.f32.mrb[27].mxu0  ;;  %v1621_v9 = vmin.u32 %v877_v61, %v846_v53  ;;  %v850_v11 = vsub.s32 %v832_v63, %v2481_v36  ;;  %v1953_v53 = vld [vmem:[#allocation5 + $0x20] ss:$12 sps:$4 sm:$0xff]   ;;  %v898_v61 = vsub.s32 0, %v853_v50 }
 0x196   : > { %v704_v15 = vmul.f32 0.06, %v581_v13  ;;  %1715 = vmatprep.subr.bf16.mxu1 %v1953_v53 }
 0x197   : > { %1757 = vmatprep.subr.bf16.mxu0 %v721_v12  ;;  %vm910_vm5 = vcmp.ge.s32.totalorder %v1621_v9, 20  ;;  %1716 = vmatpush3.bf16.msra.mxu1 %v1953_v53 }
 0x198   : > { %v713_v16 = vpack.c.bf16 %v704_v15, %v703_v14  ;;  %1758 = vmatpush3.bf16.xpose.msra.mxu0 %v721_v12  ;;  %v830_v12 = vadd.s32 72, %v2478_v34  ;;  %v1618_v15 = vmin.u32 %v868_v5, %v843_v57 }
 0x19a   : > { %v585_v17 = vpop.f32.mrb[28].mxu0  ;;  %vm907_vm6 = vcmp.ge.s32.totalorder %v1618_v15, 20  ;;  %v1956_v15 = vld [vmem:[#allocation5 + $0x68] ss:$12 sps:$4 sm:$0xff]  }
 0x19b   : > { %v587_v25 = vpop.f32.mrb[29].mxu0 }
 0x19c   : > { %v589_v26 = vpop.f32.mrb[30].mxu0  ;;  %v705_v29 = vmul.f32 0.06, %v587_v25  ;;  %v833_v25 = vadd.s32 96, %v2478_v34 }
 0x19d   : > { %v722_v27 = vpack.c.bf16 %v589_v26, %v585_v17  ;;  %v591_v28 = vpop.f32.mrb[31].mxu0 }
 0x19e   : > { %v706_v30 = vmul.f32 0.06, %v591_v28  ;;  %v889_v28 = vsub.s32 0, %v850_v11 }
 0x19f   : > { %1759 = vmatprep.subr.bf16.mxu0 %v722_v27 }
 0x1a0   : > { %v714_v31 = vpack.c.bf16 %v706_v30, %v705_v29  ;;  %1760 = vmatpush3.bf16.xpose.msra.mxu0 %v722_v27  ;;  %v1619_v27 = vmin.u32 %v871_v10, %v844_v62  ;;  %v848_v29 = vsub.s32 %v830_v12, %v2481_v36  ;;  %v1954_v62 = vld [vmem:[#allocation5 + $0x38] ss:$12 sps:$4 sm:$0xff]  }
 0x1a1   : > { %1717 = vmatprep.subr.bf16.mxu1 %v1954_v62 }
 0x1a2   : > { %vm908_vm7 = vcmp.ge.s32.totalorder %v1619_v27, 20  ;;  %v883_v43 = vsub.s32 0, %v848_v29  ;;  %1718 = vmatpush3.bf16.msra.mxu1 %v1954_v62  ;;  %v1959_v27 = vld [vmem:[#allocation5 + $0xb0] ss:$12 sps:$4 sm:$0xff]  }
 0x1a7   : > { %1762 = vmatmul.mubr.bf16.vlgmr.msra.gmra.mrb[32].mxu0 %v708_v40  ;;  %v822_v40 = vadd.s32 8, %v2478_v34 }
 0x1a8   : > { %1765 = vmatprep.mubr.bf16.mxu0 %v709_v48  ;;  %v1616_v48 = vmin.u32 %v862_v42, %v841_v38  ;;  %v1625_v42 = vmin.u32 %v889_v28, %v850_v11 }
 0x1a9   : > { %v840_v45 = vsub.s32 %v822_v40, %v2481_v36  ;;  %v851_v40 = vsub.s32 %v833_v25, %v2481_v36  ;;  %v1957_v25 = vld [vmem:[#allocation5 + $0x80] ss:$12 sps:$4 sm:$0xff]  }
 0x1aa   : > { %vm905_vm0 = vcmp.ge.s32.totalorder %v1616_v48, 20  ;;  %vm914_vm9 = vcmp.ge.s32.totalorder %v1625_v42, 20 }
 0x1ab   : > { %v859_v52 = vsub.s32 0, %v840_v45 }
 0x1ad   : > { %v1615_v59 = vmin.u32 %v859_v52, %v840_v45  ;;  %v836_v45 = vadd.s32 120, %v2478_v34  ;;  %v1623_v52 = vmin.u32 %v883_v43, %v848_v29 }
 0x1af   : > { %1766 = vmatmul.mubr.bf16.gmra.mrb[36].mxu0 %v710_v56  ;;  %v874_v56 = vsub.s32 0, %v845_v49  ;;  %vm904_vm3 = vcmp.ge.s32.totalorder %v1615_v59, 20  ;;  %vm912_vm11 = vcmp.ge.s32.totalorder %v1623_v52, 20 }
 0x1b0   : > { %1769 = vmatprep.mubr.bf16.mxu0 %v711_v0 }
 0x1b1   : > { %v1620_v4 = vmin.u32 %v874_v56, %v845_v49  ;;  %v892_v49 = vsub.s32 0, %v851_v40  ;;  %v854_v56 = vsub.s32 %v836_v45, %v2481_v36 }
 0x1b3   : > { %vm909_vm4 = vcmp.ge.s32.totalorder %v1620_v4, 20  ;;  %v1628_v4 = vmin.u32 %v898_v61, %v853_v50 }
 0x1b5   : > { %vm917_vm14 = vcmp.ge.s32.totalorder %v1628_v4, 20 }
 0x1b7   : > { %1770 = vmatmul.mubr.bf16.gmra.mrb[40].mxu0 %v712_v8  ;;  %v829_v8 = vadd.s32 64, %v2478_v34  ;;  %v895_v34 = vsub.s32 0, %v852_v44 }
 0x1b8   : > { %1773 = vmatprep.mubr.bf16.mxu0 %v713_v16  ;;  %v886_v16 = vsub.s32 0, %v849_v6 }
 0x1b9   : > { %v847_v17 = vsub.s32 %v829_v8, %v2481_v36  ;;  %v1627_v63 = vmin.u32 %v895_v34, %v852_v44 }
 0x1ba   : > { %v1624_v35 = vmin.u32 %v886_v16, %v849_v6  ;;  %v1955_v6 = vld [vmem:[#allocation5 + $0x50] ss:$12 sps:$4 sm:$0xff]  }
 0x1bb   : > { %v880_v39 = vsub.s32 0, %v847_v17  ;;  %vm916_vm13 = vcmp.ge.s32.totalorder %v1627_v63, 20  ;;  %1719 = vmatprep.subr.bf16.mxu1 %v1955_v6 }
 0x1bc   : > { %vm913_vm8 = vcmp.ge.s32.totalorder %v1624_v35, 20  ;;  %1720 = vmatpush3.bf16.msra.mxu1 %v1955_v6 }
 0x1bd   : > { %v1622_v48 = vmin.u32 %v880_v39, %v847_v17  ;;  %1721 = vmatprep.subr.bf16.mxu1 %v1956_v15 }
 0x1bf   : > { %1774 = vmatmul.mubr.bf16.gmra.mrb[44].mxu0 %v714_v31  ;;  %vm911_vm10 = vcmp.ge.s32.totalorder %v1622_v48, 20 }
 0x1c0   : > { %1722 = vmatpush3.bf16.msra.mxu1 %v1956_v15 }
 0x1c1   : > { %1723 = vmatprep.subr.bf16.mxu1 %v1957_v25 }
 0x1c4   : > { %1724 = vmatpush3.bf16.msra.mxu1 %v1957_v25 }
 0x27a   : > { %v1763_v60 = vpop.f32.mrb[32].mxu0 }
 0x27b   : > { %v757_v0 = vpop.f32.mrb[33].mxu0  ;;  %v2500_v1 = vsel %vm905_vm0, -1e+30, %v1763_v60  ;;  %v1626_v60 = vmin.u32 %v892_v49, %v851_v40 }
 0x27c   : > { %939 = vmax.xlane.f32.xlu1 %v2500_v1  ;;  %v1764_v2 = vpop.f32.mrb[34].mxu0  ;;  %v2503_v3 = vsel %vm903_vm1, -1e+30, %v757_v0  ;;  %v901_v0 = vsub.s32 0, %v854_v56 }
 0x27d   : > { %935 = vmax.xlane.f32.xlu0 %v2503_v3  ;;  %v760_v7 = vpop.f32.mrb[35].mxu0  ;;  %v2510_v13 = vsel %vm906_vm2, -1e+30, %v1764_v2  ;;  %vm915_vm12 = vcmp.ge.s32.totalorder %v1626_v60, 20 }
 0x27e   : > { %v2513_v14 = vsel %vm904_vm3, -1e+30, %v760_v7  ;;  %v1629_v8 = vmin.u32 %v901_v0, %v854_v56 }
 0x280   : > { %941 = vmax.xlane.f32.xlu1 %v2510_v13  ;;  %vm918_vm15 = vcmp.ge.s32.totalorder %v1629_v8, 20 }
 0x281   : > { %937 = vmax.xlane.f32.xlu0 %v2513_v14 }
 0x282   : > { %v1767_v26 = vpop.f32.mrb[36].mxu0 }
 0x283   : > { %v773_v30 = vpop.f32.mrb[37].mxu0  ;;  %v2519_v31 = vsel %vm909_vm4, -1e+30, %v1767_v26  ;;  %v1958_v26 = vld [vmem:[#allocation5 + $0x98] ss:$12 sps:$4 sm:$0xff]  }
 0x284   : > { %v1768_v33 = vpop.f32.mrb[38].mxu0  ;;  %v2530_v46 = vsel %vm907_vm6, -1e+30, %v773_v30  ;;  %1725 = vmatprep.subr.bf16.mxu1 %v1958_v26 }
 0x285   : > { %947 = vmax.xlane.f32.xlu0 %v2519_v31  ;;  %v776_v37 = vpop.f32.mrb[39].mxu0  ;;  %v2523_v38 = vsel %vm910_vm5, -1e+30, %v1768_v33  ;;  %1726 = vmatpush3.bf16.msra.mxu1 %v1958_v26 }
 0x286   : > { %949 = vmax.xlane.f32.xlu1 %v2523_v38  ;;  %v2533_v47 = vsel %vm908_vm7, -1e+30, %v776_v37  ;;  %1727 = vmatprep.subr.bf16.mxu1 %v1959_v27 }
 0x289   : > { %943 = vmax.xlane.f32.xlu0 %v2530_v46  ;;  %1728 = vmatpush3.bf16.msra.mxu1 %v1959_v27 }
 0x28a   : > { %945 = vmax.xlane.f32.xlu1 %v2533_v47  ;;  %v1771_v51 = vpop.f32.mrb[40].mxu0 }
 0x28b   : > { %v789_v54 = vpop.f32.mrb[41].mxu0  ;;  %v2537_v55 = vsel %vm913_vm8, -1e+30, %v1771_v51 }
 0x28c   : > { %v1772_v57 = vpop.f32.mrb[42].mxu0  ;;  %v2544_v2 = vsel %vm911_vm10, -1e+30, %v789_v54  ;;  %1730 = vmatmul.mubr.bf16.vlgmr.msra.gmra.mrb[0].mxu1 %v2445_v18 }
 0x28d   : > { %955 = vmax.xlane.f32.xlu0 %v2537_v55  ;;  %v792_v58 = vpop.f32.mrb[43].mxu0  ;;  %v2541_v59 = vsel %vm914_vm9, -1e+30, %v1772_v57  ;;  %1733 = vmatprep.mubr.bf16.mxu1 %v2449_v19 }
 0x28e   : > { %957 = vmax.xlane.f32.xlu1 %v2541_v59  ;;  %v2547_v36 = vsel %vm912_vm11, -1e+30, %v792_v58 }
 0x291   : > { %951 = vmax.xlane.f32.xlu0 %v2544_v2 }
 0x292   : > { %953 = vmax.xlane.f32.xlu1 %v2547_v36  ;;  %v1775_v5 = vpop.f32.mrb[44].mxu0 }
 0x293   : > { %v805_v7 = vpop.f32.mrb[45].mxu0  ;;  %v2556_v16 = vsel %vm917_vm14, -1e+30, %v1775_v5 }
 0x294   : > { %v1776_v9 = vpop.f32.mrb[46].mxu0  ;;  %v2550_v10 = vsel %vm915_vm12, -1e+30, %v805_v7  ;;  %1734 = vmatmul.mubr.bf16.gmra.mrb[4].mxu1 %v2453_v20 }
 0x295   : > { %959 = vmax.xlane.f32.xlu0 %v2550_v10  ;;  %v808_v11 = vpop.f32.mrb[47].mxu0  ;;  %v2559_v17 = vsel %vm918_vm15, -1e+30, %v1776_v9  ;;  %1737 = vmatprep.mubr.bf16.mxu1 %v2457_v21 }
 0x296   : > { %v2553_v12 = vsel %vm916_vm13, -1e+30, %v808_v11 }
 0x297   : > { %961 = vmax.xlane.f32.xlu1 %v2553_v12 }
 0x299   : > { %963 = vmax.xlane.f32.xlu0 %v2556_v16 }
 0x29b   : > { %965 = vmax.xlane.f32.xlu1 %v2559_v17 }
 0x29c   : > { %1738 = vmatmul.mubr.bf16.gmra.mrb[8].mxu1 %v2461_v22 }
 0x29d   : > { %1741 = vmatprep.mubr.bf16.mxu1 %v2465_v23 }
 0x2a4   : > { %1742 = vmatmul.mubr.bf16.gmra.mrb[12].mxu1 %v2469_v24 }
 0x309   : > { %v940_v28 = vpop.xlane.xlu1 %939 }
 0x30a   : > { %v969_v29 = vsub.f32 %v2500_v1, %v940_v28  ;;  %v936_v30 = vpop.xlane.xlu0 %935 }
 0x30b   : > { %v967_v32 = vsub.f32 %v2503_v3, %v936_v30 }
 0x30c   : > { %v987_v33 = vmul.f32 1.442695, %v969_v29 }
 0x30d   : > { %v983_v18 = vmul.f32 1.442695, %v967_v32  ;;  %v942_v35 = vpop.xlane.xlu1 %941 }
 0x30e   : > { %1968 = vpow2.f32 %v987_v33  ;;  %v970_v19 = vsub.f32 %v2510_v13, %v942_v35  ;;  %v938_v20 = vpop.xlane.xlu0 %937 }
 0x30f   : > { %v968_v21 = vsub.f32 %v2513_v14, %v938_v20  ;;  %1970 = vpow2.f32 %v983_v18 }
 0x310   : > { %v989_v22 = vmul.f32 1.442695, %v970_v19 }
 0x311   : > { %v985_v23 = vmul.f32 1.442695, %v968_v21 }
 0x312   : > { %1972 = vpow2.f32 %v989_v22  ;;  %v948_v24 = vpop.xlane.xlu0 %947 }
 0x313   : > { %v973_v37 = vsub.f32 %v2519_v31, %v948_v24  ;;  %v950_v1 = vpop.xlane.xlu1 %949  ;;  %1974 = vpow2.f32 %v985_v23 }
 0x314   : > { %v974_v39 = vsub.f32 %v2523_v38, %v950_v1 }
 0x315   : > { %v995_v3 = vmul.f32 1.442695, %v973_v37 }
 0x316   : > { %v997_v40 = vmul.f32 1.442695, %v974_v39  ;;  %v944_v41 = vpop.xlane.xlu0 %943 }
 0x317   : > { %1976 = vpow2.f32 %v995_v3  ;;  %v971_v13 = vsub.f32 %v2530_v46, %v944_v41  ;;  %v946_v42 = vpop.xlane.xlu1 %945 }
 0x318   : > { %v2576_v43 = vpop.eup %1968  ;;  %v972_v14 = vsub.f32 %v2533_v47, %v946_v42  ;;  %1978 = vpow2.f32 %v997_v40 }
 0x319   : > { %v991_v44 = vmul.f32 1.442695, %v971_v13  ;;  %1019 = vadd.xlane.f32.xlu0 %v2576_v43  ;;  %v2580_v48 = vpop.eup %1970 }
 0x31a   : > { %v993_v31 = vmul.f32 1.442695, %v972_v14  ;;  %v956_v45 = vpop.xlane.xlu0 %955 }
 0x31b   : > { %1980 = vpow2.f32 %v991_v44  ;;  %v977_v38 = vsub.f32 %v2537_v55, %v956_v45  ;;  %v958_v49 = vpop.xlane.xlu1 %957 }
 0x31c   : > { %v2583_v50 = vpop.eup %1972  ;;  %v978_v46 = vsub.f32 %v2541_v59, %v958_v49  ;;  %1982 = vpow2.f32 %v993_v31 }
 0x31d   : > { %v1003_v51 = vmul.f32 1.442695, %v977_v38  ;;  %1015 = vadd.xlane.f32.xlu0 %v2580_v48  ;;  %1021 = vadd.xlane.f32.xlu1 %v2583_v50  ;;  %v2589_v34 = vpop.eup %1974 }
 0x31e   : > { %v1005_v47 = vmul.f32 1.442695, %v978_v46  ;;  %v952_v52 = vpop.xlane.xlu0 %951 }
 0x31f   : > { %1984 = vpow2.f32 %v1003_v51  ;;  %v975_v53 = vsub.f32 %v2544_v2, %v952_v52  ;;  %v954_v54 = vpop.xlane.xlu1 %953 }
 0x320   : > { %v976_v55 = vsub.f32 %v2547_v36, %v954_v54  ;;  %1986 = vpow2.f32 %v1005_v47 }
 0x321   : > { %v2592_v56 = vpop.eup %1976  ;;  %v999_v57 = vmul.f32 1.442695, %v975_v53  ;;  %1017 = vadd.xlane.f32.xlu1 %v2589_v34 }
 0x322   : > { %v1001_v58 = vmul.f32 1.442695, %v976_v55  ;;  %1027 = vadd.xlane.f32.xlu0 %v2592_v56  ;;  %v960_v59 = vpop.xlane.xlu0 %959  ;;  %v2597_v61 = vpop.eup %1978 }
 0x323   : > { %1988 = vpow2.f32 %v999_v57  ;;  %v979_v60 = vsub.f32 %v2550_v10, %v960_v59 }
 0x324   : > { %v962_v62 = vpop.xlane.xlu1 %961  ;;  %1990 = vpow2.f32 %v1001_v58 }
 0x325   : > { %v2599_v63 = vpop.eup %1980  ;;  %v1007_v0 = vmul.f32 1.442695, %v979_v60  ;;  %v980_v2 = vsub.f32 %v2553_v12, %v962_v62  ;;  %1029 = vadd.xlane.f32.xlu1 %v2597_v61 }
 0x326   : > { %1023 = vadd.xlane.f32.xlu0 %v2599_v63  ;;  %v964_v36 = vpop.xlane.xlu0 %963  ;;  %v2605_v6 = vpop.eup %1982 }
 0x327   : > { %1992 = vpow2.f32 %v1007_v0  ;;  %v1009_v4 = vmul.f32 1.442695, %v980_v2  ;;  %v981_v5 = vsub.f32 %v2556_v16, %v964_v36 }
 0x328   : > { %v966_v7 = vpop.xlane.xlu1 %965 }
 0x329   : > { %v2607_v8 = vpop.eup %1984  ;;  %1994 = vpow2.f32 %v1009_v4  ;;  %v1011_v9 = vmul.f32 1.442695, %v981_v5  ;;  %v982_v10 = vsub.f32 %v2559_v17, %v966_v7  ;;  %1025 = vadd.xlane.f32.xlu1 %v2605_v6 }
 0x32a   : > { %1035 = vadd.xlane.f32.xlu0 %v2607_v8  ;;  %v2612_v12 = vpop.eup %1986 }
 0x32b   : > { %1996 = vpow2.f32 %v1011_v9  ;;  %v1013_v11 = vmul.f32 1.442695, %v982_v10 }
 0x32d   : > { %v2614_v15 = vpop.eup %1988  ;;  %1998 = vpow2.f32 %v1013_v11  ;;  %1037 = vadd.xlane.f32.xlu1 %v2612_v12 }
 0x32e   : > { %1031 = vadd.xlane.f32.xlu0 %v2614_v15  ;;  %v2618_v16 = vpop.eup %1990 }
 0x331   : > { %v2620_v25 = vpop.eup %1992  ;;  %1033 = vadd.xlane.f32.xlu1 %v2618_v16 }
 0x332   : > { %1039 = vadd.xlane.f32.xlu0 %v2620_v25 }
 0x333   : > { %v2624_v17 = vpop.eup %1994 }
 0x335   : > { %v2626_v26 = vpop.eup %1996  ;;  %1041 = vadd.xlane.f32.xlu1 %v2624_v17 }
 0x336   : > { %1043 = vadd.xlane.f32.xlu0 %v2626_v26 }
 0x337   : > { %v2630_v27 = vpop.eup %1998 }
 0x339   : > { %1045 = vadd.xlane.f32.xlu1 %v2630_v27 }
 0x35f   : > { %v1731_v28 = vpop.f32.mrb[0].mxu1 }
 0x360   : > { %v628_v29 = vpop.f32.mrb[1].mxu1 }
 0x361   : > { %v1732_v30 = vpop.f32.mrb[2].mxu1 }
 0x362   : > { %v1104_v32 = vpack.c.bf16 %v1732_v30, %v1731_v28  ;;  %v631_v33 = vpop.f32.mrb[3].mxu1 }
 0x363   : > { %v1103_v18 = vpack.c.bf16 %v631_v33, %v628_v29  ;;  %v1960_v29 = vld [vmem:[#allocation7] sm:$0xff]  }
 0x365   : > { %1777 = vmatprep.subr.bf16.mxu1 %v1103_v18 }
 0x366   : > { %1778 = vmatpush3.bf16.msra.mxu1 %v1103_v18 }
 0x367   : > { %v1735_v35 = vpop.f32.mrb[4].mxu1  ;;  %1779 = vmatprep.subr.bf16.mxu1 %v1104_v32 }
 0x368   : > { %v644_v19 = vpop.f32.mrb[5].mxu1 }
 0x369   : > { %v1736_v20 = vpop.f32.mrb[6].mxu1 }
 0x36a   : > { %v1106_v21 = vpack.c.bf16 %v1736_v20, %v1735_v35  ;;  %v647_v22 = vpop.f32.mrb[7].mxu1  ;;  %1780 = vmatpush3.bf16.msra.mxu1 %v1104_v32 }
 0x36b   : > { %v1105_v23 = vpack.c.bf16 %v647_v22, %v644_v19 }
 0x36d   : > { %1781 = vmatprep.subr.bf16.mxu1 %v1105_v23 }
 0x36e   : > { %1782 = vmatpush3.bf16.msra.mxu1 %v1105_v23 }
 0x36f   : > { %v1739_v24 = vpop.f32.mrb[8].mxu1  ;;  %1783 = vmatprep.subr.bf16.mxu1 %v1106_v21 }
 0x370   : > { %v660_v37 = vpop.f32.mrb[9].mxu1 }
 0x371   : > { %v1740_v1 = vpop.f32.mrb[10].mxu1 }
 0x372   : > { %v1108_v39 = vpack.c.bf16 %v1740_v1, %v1739_v24  ;;  %v663_v3 = vpop.f32.mrb[11].mxu1  ;;  %1784 = vmatpush3.bf16.msra.mxu1 %v1106_v21 }
 0x373   : > { %v1107_v40 = vpack.c.bf16 %v663_v3, %v660_v37 }
 0x375   : > { %1785 = vmatprep.subr.bf16.mxu1 %v1107_v40 }
 0x376   : > { %1786 = vmatpush3.bf16.msra.mxu1 %v1107_v40 }
 0x377   : > { %v1743_v41 = vpop.f32.mrb[12].mxu1  ;;  %1787 = vmatprep.subr.bf16.mxu1 %v1108_v39 }
 0x378   : > { %v676_v13 = vpop.f32.mrb[13].mxu1 }
 0x379   : > { %v1744_v42 = vpop.f32.mrb[14].mxu1 }
 0x37a   : > { %v1110_v14 = vpack.c.bf16 %v1744_v42, %v1743_v41  ;;  %v679_v44 = vpop.f32.mrb[15].mxu1  ;;  %1788 = vmatpush3.bf16.msra.mxu1 %v1108_v39 }
 0x37b   : > { %v1109_v31 = vpack.c.bf16 %v679_v44, %v676_v13 }
 0x37d   : > { %1789 = vmatprep.subr.bf16.mxu1 %v1109_v31 }
 0x37e   : > { %1790 = vmatpush3.bf16.msra.mxu1 %v1109_v31  ;;  %v1963_v31 = vld [vmem:[#allocation7 + $0x18] sm:$0xff]  }
 0x37f   : > { %1791 = vmatprep.subr.bf16.mxu1 %v1110_v14 }
 0x382   : > { %1792 = vmatpush3.bf16.msra.mxu1 %v1110_v14  ;;  %v1961_v14 = vld [vmem:[#allocation7 + $0x8] sm:$0xff]  }
 0x383   : > { %1809 = vmatprep.subr.bf16.mxu1 %v1960_v29 }
 0x3a6   : > { %v1020_v45 = vpop.xlane.xlu0 %1019 }
 0x3a7   : > { %2000 = vrcp.f32 %v1020_v45 }
 0x3aa   : > { %v1016_v38 = vpop.xlane.xlu0 %1015  ;;  %v1022_v49 = vpop.xlane.xlu1 %1021 }
 0x3ab   : > { %2002 = vrcp.f32 %v1016_v38 }
 0x3ac   : > { %2004 = vrcp.f32 %v1022_v49  ;;  %v1965_v49 = vld [vmem:[#allocation7 + $0x28] sm:$0xff]  }
 0x3ae   : > { %v1018_v46 = vpop.xlane.xlu1 %1017 }
 0x3af   : > { %2006 = vrcp.f32 %v1018_v46  ;;  %v1028_v51 = vpop.xlane.xlu0 %1027 }
 0x3b0   : > { %2008 = vrcp.f32 %v1028_v51  ;;  %v1966_v51 = vld [vmem:[#allocation7 + $0x30] sm:$0xff]  }
 0x3b1   : > { %v2001_v47 = vpop.eup %2000 }
 0x3b2   : > { %v1030_v52 = vpop.xlane.xlu1 %1029  ;;  %v1065_v53 = vmul.f32 %v2001_v47, %v2576_v43 }
 0x3b3   : > { %2010 = vrcp.f32 %v1030_v52  ;;  %v1024_v54 = vpop.xlane.xlu0 %1023 }
 0x3b4   : > { %2012 = vrcp.f32 %v1024_v54  ;;  %1081 = vst [vmem:[%s2637_s23 + $0x10] sm:$0xff] %v1065_v53 }
 0x3b5   : > { %v2003_v55 = vpop.eup %2002 }
 0x3b6   : > { %v2005_v57 = vpop.eup %2004  ;;  %v1026_v58 = vpop.xlane.xlu1 %1025  ;;  %v1063_v59 = vmul.f32 %v2003_v55, %v2580_v48 }
 0x3b7   : > { %2014 = vrcp.f32 %v1026_v58  ;;  %v1036_v60 = vpop.xlane.xlu0 %1035  ;;  %v1066_v43 = vmul.f32 %v2005_v57, %v2583_v50 }
 0x3b8   : > { %2016 = vrcp.f32 %v1036_v60  ;;  %1079 = vst [vmem:[%s2637_s23] sm:$0xff] %v1063_v59 }
 0x3b9   : > { %v2007_v62 = vpop.eup %2006  ;;  %1082 = vst [vmem:[%s2637_s23 + $0x18] sm:$0xff] %v1066_v43  ;;  %v1096_v28 = vpack.c.bf16 %v1066_v43, %v1065_v53  ;;  %v1967_v53 = vld [vmem:[#allocation7 + $0x38] sm:$0xff]  }
 0x3ba   : > { %v2009_v0 = vpop.eup %2008  ;;  %v1038_v2 = vpop.xlane.xlu1 %1037  ;;  %v1064_v36 = vmul.f32 %v2007_v62, %v2589_v34 }
 0x3bb   : > { %2018 = vrcp.f32 %v1038_v2  ;;  %v1032_v4 = vpop.xlane.xlu0 %1031  ;;  %v1069_v5 = vmul.f32 %v2009_v0, %v2592_v56 }
 0x3bc   : > { %2020 = vrcp.f32 %v1032_v4  ;;  %v1095_v48 = vpack.c.bf16 %v1064_v36, %v1063_v59  ;;  %1080 = vst [vmem:[%s2637_s23 + $0x8] sm:$0xff] %v1064_v36 }
 0x3bd   : > { %v2011_v7 = vpop.eup %2010  ;;  %1085 = vst [vmem:[%s2637_s23 + $0x30] sm:$0xff] %v1069_v5 }
 0x3be   : > { %v2013_v50 = vpop.eup %2012  ;;  %1111 = vxpose.xlu0.c.b16.start [1/8] %v1095_v48, 128  ;;  %v1034_v9 = vpop.xlane.xlu1 %1033  ;;  %v1070_v10 = vmul.f32 %v2011_v7, %v2597_v61 }
 0x3bf   : > { %2022 = vrcp.f32 %v1034_v9  ;;  %v1040_v11 = vpop.xlane.xlu0 %1039  ;;  %v1067_v34 = vmul.f32 %v2013_v50, %v2599_v63 }
 0x3c0   : > { %2024 = vrcp.f32 %v1040_v11  ;;  %1086 = vst [vmem:[%s2637_s23 + $0x38] sm:$0xff] %v1070_v10  ;;  %v1098_v22 = vpack.c.bf16 %v1070_v10, %v1069_v5 }
 0x3c1   : > { %v2015_v56 = vpop.eup %2014  ;;  %1083 = vst [vmem:[%s2637_s23 + $0x20] sm:$0xff] %v1067_v34 }
 0x3c2   : > { %v2017_v30 = vpop.eup %2016  ;;  %1112 = vxpose.xlu0.c.b16.cont [2/8] %v1096_v28, 128  ;;  %v1042_v32 = vpop.xlane.xlu1 %1041  ;;  %v1068_v33 = vmul.f32 %v2015_v56, %v2605_v6 }
 0x3c3   : > { %2026 = vrcp.f32 %v1042_v32  ;;  %v1044_v61 = vpop.xlane.xlu0 %1043  ;;  %v1073_v18 = vmul.f32 %v2017_v30, %v2607_v8 }
 0x3c4   : > { %2028 = vrcp.f32 %v1044_v61  ;;  %v1097_v63 = vpack.c.bf16 %v1068_v33, %v1067_v34  ;;  %1084 = vst [vmem:[%s2637_s23 + $0x28] sm:$0xff] %v1068_v33 }
 0x3c5   : > { %v2019_v35 = vpop.eup %2018  ;;  %1089 = vst [vmem:[%s2637_s23 + $0x50] sm:$0xff] %v1073_v18 }
 0x3c6   : > { %v2021_v19 = vpop.eup %2020  ;;  %1113 = vxpose.xlu0.c.b16.cont [3/8] %v1097_v63, 128  ;;  %v1046_v20 = vpop.xlane.xlu1 %1045  ;;  %v1074_v21 = vmul.f32 %v2019_v35, %v2612_v12 }
 0x3c7   : > { %2030 = vrcp.f32 %v1046_v20  ;;  %v1071_v6 = vmul.f32 %v2021_v19, %v2614_v15 }
 0x3c8   : > { %1090 = vst [vmem:[%s2637_s23 + $0x58] sm:$0xff] %v1074_v21  ;;  %v1100_v40 = vpack.c.bf16 %v1074_v21, %v1073_v18 }
 0x3c9   : > { %v2023_v8 = vpop.eup %2022  ;;  %1087 = vst [vmem:[%s2637_s23 + $0x40] sm:$0xff] %v1071_v6 }
 0x3ca   : > { %v2025_v23 = vpop.eup %2024  ;;  %1114 = vxpose.xlu0.c.b16.cont [4/8] %v1098_v22, 128  ;;  %v1072_v24 = vmul.f32 %v2023_v8, %v2618_v16 }
 0x3cb   : > { %v1075_v37 = vmul.f32 %v2025_v23, %v2620_v25 }
 0x3cc   : > { %v1099_v1 = vpack.c.bf16 %v1072_v24, %v1071_v6  ;;  %1088 = vst [vmem:[%s2637_s23 + $0x48] sm:$0xff] %v1072_v24 }
 0x3cd   : > { %v2027_v39 = vpop.eup %2026  ;;  %1091 = vst [vmem:[%s2637_s23 + $0x60] sm:$0xff] %v1075_v37 }
 0x3ce   : > { %v2029_v12 = vpop.eup %2028  ;;  %1115 = vxpose.xlu0.c.b16.cont [5/8] %v1099_v1, 128  ;;  %v1076_v15 = vmul.f32 %v2027_v39, %v2624_v17  ;;  %v1962_v17 = vld [vmem:[#allocation7 + $0x10] sm:$0xff]  }
 0x3cf   : > { %v1077_v3 = vmul.f32 %v2029_v12, %v2626_v26 }
 0x3d0   : > { %1092 = vst [vmem:[%s2637_s23 + $0x68] sm:$0xff] %v1076_v15  ;;  %v1101_v13 = vpack.c.bf16 %v1076_v15, %v1075_v37 }
 0x3d1   : > { %v2031_v41 = vpop.eup %2030  ;;  %1093 = vst [vmem:[%s2637_s23 + $0x70] sm:$0xff] %v1077_v3 }
 0x3d2   : > { %1116 = vxpose.xlu0.c.b16.cont [6/8] %v1100_v40, 128  ;;  %v1078_v16 = vmul.f32 %v2031_v41, %v2630_v27  ;;  %v1964_v27 = vld [vmem:[#allocation7 + $0x20] sm:$0xff]  }
 0x3d4   : > { %1094 = vst [vmem:[%s2637_s23 + $0x78] sm:$0xff] %v1078_v16  ;;  %v1102_v25 = vpack.c.bf16 %v1078_v16, %v1077_v3 }
 0x3d6   : > { %1117 = vxpose.xlu0.c.b16.cont [7/8] %v1101_v13, 128 }
 0x3da   : > { %1118 = vxpose.xlu0.c.b16.end [8/8] %v1102_v25, 128 }
 0x424   : > { %v1119_v42 = vpop.trf.xlu0 }
 0x425   : > { %1793 = vmatprep.mubr.bf16.mxu1 %v1119_v42 }
 0x428   : > { %v1120_v44 = vpop.trf.xlu0 }
 0x429   : > { %1794 = vmatmul.mubr.bf16.vlgmr.msra.gmra.mrb[16].mxu1 %v1120_v44 }
 0x42a   : > { %1810 = vmatpush3.bf16.msra.mxu1 %v1960_v29 }
 0x42b   : > { %1811 = vmatprep.subr.bf16.mxu1 %v1961_v14 }
 0x42c   : > { %v1121_v26 = vpop.trf.xlu0 }
 0x42d   : > { %1797 = vmatprep.mubr.bf16.mxu1 %v1121_v26 }
 0x42e   : > { %1812 = vmatpush3.bf16.msra.mxu1 %v1961_v14 }
 0x42f   : > { %1813 = vmatprep.subr.bf16.mxu1 %v1962_v17 }
 0x430   : > { %v1122_v45 = vpop.trf.xlu0 }
 0x431   : > { %1798 = vmatmul.mubr.bf16.gmra.mrb[20].mxu1 %v1122_v45 }
 0x432   : > { %1814 = vmatpush3.bf16.msra.mxu1 %v1962_v17 }
 0x433   : > { %1815 = vmatprep.subr.bf16.mxu1 %v1963_v31 }
 0x434   : > { %v1123_v38 = vpop.trf.xlu0 }
 0x435   : > { %1801 = vmatprep.mubr.bf16.mxu1 %v1123_v38 }
 0x436   : > { %1816 = vmatpush3.bf16.msra.mxu1 %v1963_v31 }
 0x437   : > { %1817 = vmatprep.subr.bf16.mxu1 %v1964_v27 }
 0x438   : > { %v1124_v46 = vpop.trf.xlu0 }
 0x439   : > { %1802 = vmatmul.mubr.bf16.gmra.mrb[24].mxu1 %v1124_v46 }
 0x43a   : > { %1818 = vmatpush3.bf16.msra.mxu1 %v1964_v27 }
 0x43b   : > { %1819 = vmatprep.subr.bf16.mxu1 %v1965_v49 }
 0x43c   : > { %v1125_v47 = vpop.trf.xlu0 }
 0x43d   : > { %1805 = vmatprep.mubr.bf16.mxu1 %v1125_v47 }
 0x43e   : > { %1820 = vmatpush3.bf16.msra.mxu1 %v1965_v49 }
 0x43f   : > { %1821 = vmatprep.subr.bf16.mxu1 %v1966_v51 }
 0x440   : > { %v1126_v52 = vpop.trf.xlu0 }
 0x441   : > { %1806 = vmatmul.mubr.bf16.gmra.mrb[28].mxu1 %v1126_v52 }
 0x442   : > { %1822 = vmatpush3.bf16.msra.mxu1 %v1966_v51 }
 0x443   : > { %1823 = vmatprep.subr.bf16.mxu1 %v1967_v53 }
 0x446   : > { %1824 = vmatpush3.bf16.msra.mxu1 %v1967_v53 }
 0x4fc   : > { %v1795_v54 = vpop.f32.mrb[16].mxu1 }
 0x4fd   : > { %v1161_v55 = vpop.f32.mrb[17].mxu1 }
 0x4fe   : > { %v1796_v57 = vpop.f32.mrb[18].mxu1 }
 0x4ff   : > { %v1225_v58 = vpack.c.bf16 %v1796_v57, %v1795_v54  ;;  %v1164_v59 = vpop.f32.mrb[19].mxu1 }
 0x500   : > { %v1224_v60 = vpack.c.bf16 %v1164_v59, %v1161_v55 }
 0x502   : > { %1825 = vmatprep.mubr.bf16.mxu1 %v1224_v60 }
 0x503   : > { %1826 = vmatmul.mubr.bf16.vlgmr.msra.gmra.mrb[32].mxu1 %v1225_v58 }
 0x504   : > { %v1799_v43 = vpop.f32.mrb[20].mxu1 }
 0x505   : > { %v1177_v62 = vpop.f32.mrb[21].mxu1 }
 0x506   : > { %v1800_v0 = vpop.f32.mrb[22].mxu1 }
 0x507   : > { %v1227_v2 = vpack.c.bf16 %v1800_v0, %v1799_v43  ;;  %v1180_v36 = vpop.f32.mrb[23].mxu1 }
 0x508   : > { %v1226_v4 = vpack.c.bf16 %v1180_v36, %v1177_v62 }
 0x50a   : > { %1829 = vmatprep.mubr.bf16.mxu1 %v1226_v4 }
 0x50b   : > { %1830 = vmatmul.mubr.bf16.gmra.mrb[36].mxu1 %v1227_v2 }
 0x50c   : > { %v1803_v5 = vpop.f32.mrb[24].mxu1 }
 0x50d   : > { %v1193_v48 = vpop.f32.mrb[25].mxu1 }
 0x50e   : > { %v1804_v7 = vpop.f32.mrb[26].mxu1 }
 0x50f   : > { %v1229_v50 = vpack.c.bf16 %v1804_v7, %v1803_v5  ;;  %v1196_v9 = vpop.f32.mrb[27].mxu1 }
 0x510   : > { %v1228_v10 = vpack.c.bf16 %v1196_v9, %v1193_v48 }
 0x512   : > { %1833 = vmatprep.mubr.bf16.mxu1 %v1228_v10 }
 0x513   : > { %1834 = vmatmul.mubr.bf16.gmra.mrb[40].mxu1 %v1229_v50 }
 0x514   : > { %v1807_v11 = vpop.f32.mrb[28].mxu1 }
 0x515   : > { %v1209_v34 = vpop.f32.mrb[29].mxu1 }
 0x516   : > { %v1808_v28 = vpop.f32.mrb[30].mxu1 }
 0x517   : > { %v1231_v56 = vpack.c.bf16 %v1808_v28, %v1807_v11  ;;  %v1212_v29 = vpop.f32.mrb[31].mxu1 }
 0x518   : > { %v1230_v30 = vpack.c.bf16 %v1212_v29, %v1209_v34 }
 0x51a   : > { %1837 = vmatprep.mubr.bf16.mxu1 %v1230_v30 }
 0x51b   : > { %1838 = vmatmul.mubr.bf16.gmra.mrb[44].mxu1 %v1231_v56 }
 0x51c   : > { %2131 = shalt.err (!%p2128_p7)
}
 0x51d   : > { %s2132_s12 = scalar_lea.hbm %s2676_s6, 2048  ;;  %s2136_s28 = scalar_lea.hbm %s2786_s4, 8192 }
 0x51e   : > { %p2133_p9 = scmp.ne.s32.totalorder %s2676_s6, %s2132_s12  ;;  %p2137_p5 = scmp.lt.u32.totalorder %s2676_s6, %s2786_s4 }
 0x51f   : > { %p2138_p10 = scmp.lt.u32.totalorder %s2136_s28, %s2132_s12  ;;  %p2140_p1 = scmp.lt.u32.totalorder %s2132_s12, %s2676_s6 }
 0x520   : > { %p2134_p12 = pnand %p2133_p9, %p2377_p6 }
 0x521   : > { %p2139_p11 = por %p2138_p10, %p2137_p5 }
 0x522   : > { %p2135_p0 = pneg %p2134_p12 }
 0x523   : > { %p2141_p2 = por %p2140_p1, %p2139_p11 }
 0x525   : > { %p2142_p4 = pnand %p2141_p2, %p2135_p0 }
 0x527   : > { %2145 = shalt.err (!%p2142_p4)
}
 0x528   : > { %s2231_s30 = smov 128   ;;  %s2232_s27 = smov 8  }
 0x529   : > { %1852 = dma.vmem_to_hbm [thread:$0]  (%p2377_p6), %s2679_s25, 2048, %s2676_s6, %s1415_s9, %s2231_s30, %s2231_s30, %s2232_s27  }
 0x52a   : > { %s2710_s20 = scalar_lea.vmem [#allocation8], %s1580_s21  ;;  %s2732_s9 = scalar_lea.hbm %s2785_s3, %s1647_s7 }
 0x52b   : > { %s1428_s21 = sshll.u32 %s2710_s20, 4  ;;  %s1410_s29 = scalar_lea.sflag [#allocation4], %s2429_s10  ;;  %s2734_s21 = int_to_ptr.vmem [resolvable:$true] %s1428_s21 }
 0x52c   : > { %s2146_s5 = scalar_lea.vmem %s2734_s21, 2048  ;;  %s2233_s19 = smov [#allocation8]  }
 0x52d   : > { %p2147_p8 = scmp.ne.s32.totalorder %s2734_s21, %s2146_s5  ;;  %s2150_s12 = sshll.u32 %s2233_s19, 4  ;;  %s2151_s12 = int_to_ptr.vmem [resolvable:$false] %s2150_s12 }
 0x52e   : > { %s2152_s13 = scalar_lea.vmem %s2151_s12, 4096  ;;  %p2153_p7 = scmp.lt.s32.totalorder %s2734_s21, %s2151_s12 }
 0x52f   : > { %p2148_p13 = pnand %p2147_p8, %p2377_p6  ;;  %p2154_p9 = scmp.lt.s32.totalorder %s2152_s13, %s2146_s5 }
 0x531   : > { %p2149_p3 = pneg %p2148_p13  ;;  %p2155_p12 = por %p2154_p9, %p2153_p7 }
 0x533   : > { %p2156_p0 = pnand %p2155_p12, %p2149_p3 }
 0x5d6   : > { %v1827_v32 = vpop.f32.mrb[32].mxu1 }
 0x5d7   : > { %1395 = vst [vmem:[%s2710_s20 + $0x10] sm:$0xff] %v1827_v32  ;;  %v1330_v33 = vpop.f32.mrb[33].mxu1 }
 0x5d8   : > { %1393 = vst [vmem:[%s2710_s20] sm:$0xff] %v1330_v33  ;;  %v1828_v61 = vpop.f32.mrb[34].mxu1 }
 0x5d9   : > { %1396 = vst [vmem:[%s2710_s20 + $0x18] sm:$0xff] %v1828_v61  ;;  %v1333_v18 = vpop.f32.mrb[35].mxu1 }
 0x5da   : > { %1394 = vst [vmem:[%s2710_s20 + $0x8] sm:$0xff] %v1333_v18 }
 0x5de   : > { %v1831_v63 = vpop.f32.mrb[36].mxu1 }
 0x5df   : > { %1399 = vst [vmem:[%s2710_s20 + $0x30] sm:$0xff] %v1831_v63  ;;  %v1346_v35 = vpop.f32.mrb[37].mxu1 }
 0x5e0   : > { %1397 = vst [vmem:[%s2710_s20 + $0x20] sm:$0xff] %v1346_v35  ;;  %v1832_v19 = vpop.f32.mrb[38].mxu1 }
 0x5e1   : > { %1400 = vst [vmem:[%s2710_s20 + $0x38] sm:$0xff] %v1832_v19  ;;  %v1349_v20 = vpop.f32.mrb[39].mxu1 }
 0x5e2   : > { %1398 = vst [vmem:[%s2710_s20 + $0x28] sm:$0xff] %v1349_v20 }
 0x5e6   : > { %v1835_v21 = vpop.f32.mrb[40].mxu1 }
 0x5e7   : > { %1403 = vst [vmem:[%s2710_s20 + $0x50] sm:$0xff] %v1835_v21  ;;  %v1362_v6 = vpop.f32.mrb[41].mxu1 }
 0x5e8   : > { %1401 = vst [vmem:[%s2710_s20 + $0x40] sm:$0xff] %v1362_v6  ;;  %v1836_v22 = vpop.f32.mrb[42].mxu1 }
 0x5e9   : > { %1404 = vst [vmem:[%s2710_s20 + $0x58] sm:$0xff] %v1836_v22  ;;  %v1365_v8 = vpop.f32.mrb[43].mxu1 }
 0x5ea   : > { %1402 = vst [vmem:[%s2710_s20 + $0x48] sm:$0xff] %v1365_v8 }
 0x5ee   : > { %v1839_v23 = vpop.f32.mrb[44].mxu1 }
 0x5ef   : > { %1407 = vst [vmem:[%s2710_s20 + $0x70] sm:$0xff] %v1839_v23  ;;  %v1378_v24 = vpop.f32.mrb[45].mxu1 }
 0x5f0   : > { %1405 = vst [vmem:[%s2710_s20 + $0x60] sm:$0xff] %v1378_v24  ;;  %v1840_v37 = vpop.f32.mrb[46].mxu1 }
 0x5f1   : > { %1408 = vst [vmem:[%s2710_s20 + $0x78] sm:$0xff] %v1840_v37  ;;  %v1381_v1 = vpop.f32.mrb[47].mxu1 }
 0x5f2   : > { %1406 = vst [vmem:[%s2710_s20 + $0x68] sm:$0xff] %v1381_v1 }
 0x5f3   : > { %2159 = shalt.err (!%p2156_p0)
}
 0x5f4   : > { %s2160_s7 = scalar_lea.hbm %s2732_s9, 2048  ;;  %s2164_s23 = scalar_lea.hbm %s2785_s3, 8192 }
 0x5f5   : > { %p2161_p5 = scmp.ne.s32.totalorder %s2732_s9, %s2160_s7  ;;  %p2165_p1 = scmp.lt.u32.totalorder %s2732_s9, %s2785_s3 }
 0x5f6   : > { %p2166_p2 = scmp.lt.u32.totalorder %s2164_s23, %s2160_s7  ;;  %p2168_p8 = scmp.lt.u32.totalorder %s2160_s7, %s2732_s9 }
 0x5f7   : > { %p2162_p10 = pnand %p2161_p5, %p2377_p6 }
 0x5f8   : > { %p2167_p4 = por %p2166_p2, %p2165_p1 }
 0x5f9   : > { %p2163_p11 = pneg %p2162_p10 }
 0x5fa   : > { %p2169_p13 = por %p2168_p8, %p2167_p4 }
 0x5fc   : > { %p2170_p3 = pnand %p2169_p13, %p2163_p11 }
 0x5fe   : > { %2173 = shalt.err (!%p2170_p3)
}
 0x5ff   : > { %1851 = dma.vmem_to_hbm [thread:$0]  (%p2377_p6), %s2734_s21, 2048, %s2732_s9, %s1410_s29, %s2231_s30, %s2231_s30, %s2232_s27  }
 0x600 PF: > { %p1878_p7 = scmp.ge.s32.totalorder %s2220_s18, 2  ;;  %s1459_s6 = sand.u32 1, %s2208_s15  }
 0x601   : > { %p2801_p9 = scmp.ne.s32.totalorder %s2791_s22, 0  ;;  %s1460_s25 = scalar_lea.sflag [#allocation4], %s1459_s6 }
 0x603   : > { %p1867_p12 = pnand %p1878_p7, %p2801_p9 }
 0x605   : > { %2199 = dma.done.wait (!%p1867_p12), %s1460_s25, 2048  }
 0x606   : > { %2201 = vsyncadd (!%p1867_p12), %s1460_s25, 4294965248  ;;  %s1469_s26 = scalar_lea.sflag [#allocation10], %s1459_s6 }
 0x607   : > { %2203 = dma.done.wait (!%p1867_p12), %s1469_s26, 2048  }
 0x608   : > { %2205 = vsyncadd (!%p1867_p12), %s1469_s26, 4294965248  ;;  %p22_p6 = scmp.ge.s32.totalorder %s2364_s11, 6   ;;  %s2802_s15 = smov %s2212_s16 }
 0x609   : > { %s2803_s16 = smov %s2216_s17  ;;  %s2804_s17 = smov %s2373_s14 }
 0x60a   : > { %s2805_s18 = smov %s2364_s11  ;;  %24 = sbr.rel (!%p22_p6) target bundleno = 8 (0x8), region = 102 }
 0x611   :  { %1474 = vsyncpa [#allocation3], 1 }
 0x612   :  { %1476 = vsyncpa [#allocation3 + $0x1], 1 }
 0x613   :  { %1477 = vsyncpa [#allocation6], 1 }
 0x614   :  { %1478 = vsyncpa [#allocation4], 1 }
 0x615   :  { %1480 = vsyncpa [#allocation4 + $0x1], 1 }
 0x616   :  { %1481 = vsyncpa [#allocation10], 1 }
 0x617   :  { %1483 = vsyncpa [#allocation10 + $0x1], 1 }

</bundles_post_ra>
